<compile_context>
chip_gen: v7x
topology: tpu7x:2x2x1
jax: 0.10.0
libtpu: 0.0.40
codegen_flags: <defaults>
</compile_context>

<pallas_src>
import math
import numpy as np
import jax
import jax.numpy as jnp
from jax.experimental import pallas as pl
from jax.experimental.pallas import tpu as pltpu

LANES = 128
VMEM_LIMIT = 32 * 1024 * 1024  # safe on v5e/v6e/v7x; raises v5e's 16 MiB default


def _round_up(x, m):
    return ((x + m - 1) // m) * m


# --------------------------------------------------------------------------
# Kernel 1: fused LinearOutputStack heads (noise params + osc re/im)
# --------------------------------------------------------------------------
def _fused_heads_kernel(x_ref, whn_ref, bhn_ref, wn_ref, bn_ref,
                        who_ref, bho_ref, wo_ref, bo_ref,
                        noise_ref, reim_ref):
    x = x_ref[...]                                             # (T, C_pad)

    # --- noise head stack ---
    h = x
    for l in range(whn_ref.shape[0]):                          # unrolled at trace time
        h = jnp.dot(h, whn_ref[l], preferred_element_type=jnp.float32) + bhn_ref[l]
        h = jnp.where(h > 0, h, 0.2 * h)                       # LeakyReLU(0.2)
    noise_ref[...] = (jnp.dot(h, wn_ref[...], preferred_element_type=jnp.float32)
                      + bn_ref[...]).astype(noise_ref.dtype)   # (T, n_coeffs_pad)

    # --- oscillator head stack (separate hidden weights, same input) ---
    g = x
    for l in range(who_ref.shape[0]):
        g = jnp.dot(g, who_ref[l], preferred_element_type=jnp.float32) + bho_ref[l]
        g = jnp.where(g > 0, g, 0.2 * g)
    reim_ref[...] = (jnp.dot(g, wo_ref[...], preferred_element_type=jnp.float32)
                     + bo_ref[...]).astype(reim_ref.dtype)     # (T, [re|im] padded)


def fused_heads(x_pad, params, T, n_coeffs_pad, reim_pad):
    vmem = pl.BlockSpec(memory_space=pltpu.MemorySpace.VMEM)
    return pl.pallas_call(
        _fused_heads_kernel,
        out_shape=(jax.ShapeDtypeStruct((T, n_coeffs_pad), jnp.float32),
                   jax.ShapeDtypeStruct((T, reim_pad), jnp.float32)),
        in_specs=[vmem] * 9,
        out_specs=[vmem, vmem],
        compiler_params=pltpu.CompilerParams(vmem_limit_bytes=VMEM_LIMIT),
    )(x_pad, *params)


# --------------------------------------------------------------------------
# Kernel 2: oscillator bank synthesis (interp -> blocked cumsum -> sin -> sum)
# --------------------------------------------------------------------------
def _osc_synth_kernel(amp_ref, freq_ref, interp_ref, noise_ref, out_ref, carry_ref):
    # amp/freq: (n_osc, T) resident; interp: (T, SBLK); noise/out: (1, SBLK)
    # carry_ref: (n_osc, 1) running phase from previous sample blocks.
    b = pl.program_id(0)

    @pl.when(b == 0)
    def _():
        carry_ref[...] = jnp.zeros_like(carry_ref)

    amp_i = jnp.dot(amp_ref[...], interp_ref[...], preferred_element_type=jnp.float32)
    freq_i = jnp.dot(freq_ref[...], interp_ref[...],
                     preferred_element_type=jnp.float32) * jnp.float32(math.pi)

    # In-block inclusive prefix sum via a small triangular matrix generated in-kernel
    # (no HBM DMA; replaces the old O(S^2) cumsum matrix).
    sblk = out_ref.shape[-1]
    r = jax.lax.broadcasted_iota(jnp.int32, (sblk, sblk), 0)
    c = jax.lax.broadcasted_iota(jnp.int32, (sblk, sblk), 1)
    tri = jnp.where(r <= c, 1.0, 0.0).astype(jnp.float32)      # tri[s', s] = [s' <= s]

    phase = jnp.dot(freq_i, tri, preferred_element_type=jnp.float32) + carry_ref[...]
    carry_ref[...] += jnp.sum(freq_i, axis=-1, keepdims=True)  # carry into next block

    osc = jnp.sin(phase) * amp_i                               # (n_osc, SBLK)
    sig = jnp.sum(osc, axis=0, keepdims=True) + noise_ref[...]
    out_ref[...] = sig.astype(out_ref.dtype)


def _pick_sblk(S):
    for cand in (1024, 512, 256, 128):
        if S % cand == 0:
            return cand
    return S  # small / odd S: single whole-array block


def osc_synth(amp, freq, interp, noise_row):
    n_osc, T = amp.shape
    S = interp.shape[1]
    sblk = _pick_sblk(S)
    nblk = S // sblk
    grid_spec = pltpu.PrefetchScalarGridSpec(
        num_scalar_prefetch=0,
        grid=(nblk,),
        in_specs=[
            pl.BlockSpec((n_osc, T), lambda b: (0, 0)),
            pl.BlockSpec((n_osc, T), lambda b: (0, 0)),
            pl.BlockSpec((T, sblk), lambda b: (0, b)),
            pl.BlockSpec((1, sblk), lambda b: (0, b)),
        ],
        out_specs=pl.BlockSpec((1, sblk), lambda b: (0, b)),
        scratch_shapes=[pltpu.VMEM((n_osc, 1), jnp.float32)],
    )
    return pl.pallas_call(
        _osc_synth_kernel,
        out_shape=jax.ShapeDtypeStruct((1, S), jnp.float32),
        grid_spec=grid_spec,
        compiler_params=pltpu.CompilerParams(
            dimension_semantics=("arbitrary",),   # sequential carry over sample blocks
            vmem_limit_bytes=VMEM_LIMIT),
    )(amp, freq, interp, noise_row)


# --------------------------------------------------------------------------
# Glue (plain JAX): param init/packing, interpolation matrix, noise_bank2
# --------------------------------------------------------------------------
def init_linear_output_stack(key, channels, layers, out_channels):
    keys = jax.random.split(key, 2 * (layers + 1))
    scale = 1.0 / math.sqrt(channels)
    wh = [scale * jax.random.normal(keys[2 * i], (channels, channels), jnp.float32)
          for i in range(layers)]
    bh = [scale * jax.random.normal(keys[2 * i + 1], (channels,), jnp.float32)
          for i in range(layers)]
    wf = scale * jax.random.normal(keys[2 * layers], (channels, out_channels), jnp.float32)
    bf = scale * jax.random.normal(keys[2 * layers + 1], (out_channels,), jnp.float32)
    return wh, bh, wf, bf


def _pad_mat(w, rows, cols):
    out = jnp.zeros((rows, cols), jnp.float32)
    return out.at[:w.shape[0], :w.shape[1]].set(w)


def _pad_vec(b, cols):
    out = jnp.zeros((1, cols), jnp.float32)
    return out.at[0, :b.shape[0]].set(b)


def _pack_params(noise_raw, osc_raw, c_pad, n_coeffs_pad, n_osc):
    """Zero-pad everything to 128-lane widths and de-interleave the osc head into
    [re | im] column blocks (semantics-preserving: padded rows/cols are zero)."""
    whn, bhn, wfn, bfn = noise_raw
    who, bho, wfo, bfo = osc_raw

    whn_p = jnp.stack([_pad_mat(w, c_pad, c_pad) for w in whn])
    bhn_p = jnp.stack([_pad_vec(b, c_pad) for b in bhn])
    who_p = jnp.stack([_pad_mat(w, c_pad, c_pad) for w in who])
    bho_p = jnp.stack([_pad_vec(b, c_pad) for b in bho])

    wn_p = _pad_mat(wfn, c_pad, n_coeffs_pad)
    bn_p = _pad_vec(bfn, n_coeffs_pad)

    # osc head column j = k*2 + c  (c=0 -> re_k, c=1 -> im_k); permute to [re | im].
    wre, wim = wfo[:, 0::2], wfo[:, 1::2]
    bre, bim = bfo[0::2], bfo[1::2]
    reim_pad = max(LANES, _round_up(2 * n_osc, LANES))
    wo_p = _pad_mat(jnp.concatenate([wre, wim], axis=1), c_pad, reim_pad)
    bo_p = _pad_vec(jnp.concatenate([bre, bim], axis=0), reim_pad)

    return (whn_p, bhn_p, wn_p, bn_p, who_p, bho_p, wo_p, bo_p), reim_pad


def make_linear_interp_matrix(in_size, out_size):
    """Matrix M s.t. (x @ M) == F.interpolate(x, out_size, mode='linear', align_corners=False)."""
    scale = in_size / out_size
    M = np.zeros((in_size, out_size), dtype=np.float32)
    for j in range(out_size):
        src = (j + 0.5) * scale - 0.5
        src = max(src, 0.0)
        i0 = min(int(np.floor(src)), in_size - 1)
        i1 = i0 + 1 if i0 < in_size - 1 else i0
        lam1 = src - i0
        M[i0, j] += 1.0 - lam1
        M[i1, j] += lam1
    return jnp.asarray(M)


def noise_bank2(mag_fc, key):
    """mag_fc: (frames, n_coeffs) per-frame magnitudes -> filtered noise (1, 1, hop*frames)."""
    frames, n_coeffs = mag_fc.shape
    window = (n_coeffs - 1) * 2
    hop = window // 2
    total = hop * frames
    # TODO(synk): white-noise STFT filtering needs rfft/irfft; Pallas TPU has no FFT
    # primitive, so this branch stays in plain JAX (jnp.fft).
    noise = jax.random.uniform(key, (1, total + hop), jnp.float32, -1.0, 1.0)
    idx = jnp.arange(frames)[:, None] * hop + jnp.arange(window)[None, :]
    noise_frames = noise[:, idx]                                  # (1, frames, window)
    coeffs = jnp.fft.rfft(noise_frames, axis=-1, norm="ortho")
    coeffs = coeffs * mag_fc[None]                                # per-frame magnitude filter
    filt = jnp.fft.irfft(coeffs, n=window, axis=-1, norm="ortho")  # (1, frames, window)
    # Vectorized 50%-hop overlap-add: even/odd frame groups tile disjoint spans.
    out = jnp.zeros((1, total + hop), jnp.float32)
    even = filt[:, 0::2].reshape(1, -1)                           # starts at 0
    odd = filt[:, 1::2].reshape(1, -1)                            # starts at hop
    out = out.at[:, :even.shape[1]].add(even)
    out = out.at[:, hop:hop + odd.shape[1]].add(odd)
    return out[:, None, :total]                                   # (1, 1, total)


# --------------------------------------------------------------------------
# Synth module
# --------------------------------------------------------------------------
class SynthPallas:
    def __init__(self, layers, channels, samples_per_frame, n_osc=64, *, key):
        self.layers = layers
        self.channels = channels
        self.samples_per_frame = samples_per_frame
        self.n_coeffs = samples_per_frame * 2 // 2 + 1
        self.n_osc = n_osc
        self.c_pad = max(LANES, _round_up(channels, LANES))
        self.n_coeffs_pad = max(LANES, _round_up(self.n_coeffs, LANES))
        k1, k2 = jax.random.split(key)
        noise_raw = init_linear_output_stack(k1, channels, layers, self.n_coeffs)
        osc_raw = init_linear_output_stack(k2, channels, layers, 2 * n_osc)
        self.params, self.reim_pad = _pack_params(
            noise_raw, osc_raw, self.c_pad, self.n_coeffs_pad, n_osc)
        self._interp_cache = {}   # hoisted: built once per `time`, not per call

    def _interp(self, time):
        m = self._interp_cache.get(time)
        if m is None:
            m = make_linear_interp_matrix(time, self.samples_per_frame * time)
            self._interp_cache[time] = m
        return m

    def __call__(self, x, noise_key):
        batch, time, channels = x.shape
        if batch != 1:
            raise NotImplementedError("Only batch size of 1 is supported")

        x2d = x[0].astype(jnp.float32)                               # (T, C)
        if channels < self.c_pad:
            x2d = jnp.pad(x2d, ((0, 0), (0, self.c_pad - channels)))

        # --- fused projection heads (single Pallas MXU kernel, lane-dense outputs) ---
        noise_p_pad, reim = fused_heads(x2d, self.params, time,
                                        self.n_coeffs_pad, self.reim_pad)
        noise_p = noise_p_pad[:, :self.n_coeffs]                     # (T, n_coeffs)
        re = reim[:, :self.n_osc]                                    # (T, n_osc)
        im = reim[:, self.n_osc:2 * self.n_osc]

        # --- noise branch (FFT filtering stays in JAX) ---
        noise = noise_bank2(noise_p, noise_key)                      # (1, 1, S)

        # --- amp/freq epilogue (tiny (T, n_osc) arrays) ---
        # TODO(synk): arctan2 has no guaranteed Mosaic lowering, so this tiny epilogue
        # stays in XLA; everything size-S runs inside the Pallas kernels.
        amp = jnp.sqrt(re * re + im * im).T                          # (n_osc, T)
        freq = (jnp.arctan2(im, re) / math.pi).T * 0.98 + 0.0036     # (n_osc, T)

        # --- oscillator branch: blocked interp + running-phase cumsum + sin + sum ---
        interp = self._interp(time)                                  # (T, S), cached
        sig = osc_synth(amp, freq, interp, noise[0])                 # (1, S)
        return sig[None]                                             # (1, 1, S)


if __name__ == "__main__":
    key = jax.random.PRNGKey(0)
    k_param, k_x, k_noise = jax.random.split(key, 3)

    layers, channels, samples_per_frame, n_osc = 2, 32, 16, 64
    time = 8

    synth = SynthPallas(layers, channels, samples_per_frame, n_osc, key=k_param)
    x = jax.random.normal(k_x, (1, time, channels), jnp.float32)

    out = synth(x, k_noise)
    out = jax.block_until_ready(out)
    assert out.shape == (1, 1, samples_per_frame * time), out.shape
    assert bool(jnp.all(jnp.isfinite(out)))
    print("KERNEL_OK")
</pallas_src>

<mosaic_0001>
module attributes {stable_mosaic.version = 11 : i64} {
  func.func @_fused_heads_kernel(%arg0: memref<8x128xf32, #tpu.memory_space<vmem>>, %arg1: memref<2x128x128xf32, #tpu.memory_space<vmem>>, %arg2: memref<2x1x128xf32, #tpu.memory_space<vmem>>, %arg3: memref<128x128xf32, #tpu.memory_space<vmem>>, %arg4: memref<1x128xf32, #tpu.memory_space<vmem>>, %arg5: memref<2x128x128xf32, #tpu.memory_space<vmem>>, %arg6: memref<2x1x128xf32, #tpu.memory_space<vmem>>, %arg7: memref<128x128xf32, #tpu.memory_space<vmem>>, %arg8: memref<1x128xf32, #tpu.memory_space<vmem>>, %arg9: memref<8x128xf32, #tpu.memory_space<vmem>>, %arg10: memref<8x128xf32, #tpu.memory_space<vmem>>) attributes {dimension_semantics = [], scalar_prefetch = 0 : i64, scratch_operands = 0 : i64, tpu.core_type = #tpu.core_type<tc>} {
    %c0 = arith.constant 0 : index
    %c0_0 = arith.constant 0 : index
    %0 = vector.load %arg0[%c0, %c0_0] : memref<8x128xf32, #tpu.memory_space<vmem>>, vector<8x128xf32>
    %c0_1 = arith.constant 0 : index
    %c0_2 = arith.constant 0 : index
    %c0_3 = arith.constant 0 : index
    %1 = vector.load %arg1[%c0_1, %c0_2, %c0_3] : memref<2x128x128xf32, #tpu.memory_space<vmem>>, vector<1x128x128xf32>
    %2 = vector.shape_cast %1 : vector<1x128x128xf32> to vector<128x128xf32>
    %cst = arith.constant dense<0.000000e+00> : vector<8x128xf32>
    %3 = tpu.matmul %0, %2, %cst {dimension_numbers = #tpu.dot_dimension_numbers<[1], [0], [0], [1], [0, 0, 1, 1], [], []>} : vector<8x128xf32>, vector<128x128xf32>, vector<8x128xf32> -> vector<8x128xf32>
    %c0_4 = arith.constant 0 : index
    %c0_5 = arith.constant 0 : index
    %c0_6 = arith.constant 0 : index
    %4 = vector.load %arg2[%c0_4, %c0_5, %c0_6] : memref<2x1x128xf32, #tpu.memory_space<vmem>>, vector<1x1x128xf32>
    %5 = vector.shape_cast %4 : vector<1x1x128xf32> to vector<1x128xf32>
    %6 = vector.broadcast %5 : vector<1x128xf32> to vector<8x128xf32>
    %7 = arith.addf %3, %6 : vector<8x128xf32>
    %cst_7 = arith.constant 0.000000e+00 : f32
    %8 = vector.broadcast %cst_7 : f32 to vector<8x128xf32>
    %9 = arith.cmpf ogt, %7, %8 : vector<8x128xf32>
    %cst_8 = arith.constant 2.000000e-01 : f32
    %10 = vector.broadcast %cst_8 : f32 to vector<8x128xf32>
    %11 = arith.mulf %10, %7 : vector<8x128xf32>
    %12 = arith.select %9, %7, %11 : vector<8x128xi1>, vector<8x128xf32>
    %c1 = arith.constant 1 : index
    %c0_9 = arith.constant 0 : index
    %c0_10 = arith.constant 0 : index
    %13 = vector.load %arg1[%c1, %c0_9, %c0_10] : memref<2x128x128xf32, #tpu.memory_space<vmem>>, vector<1x128x128xf32>
    %14 = vector.shape_cast %13 : vector<1x128x128xf32> to vector<128x128xf32>
    %cst_11 = arith.constant dense<0.000000e+00> : vector<8x128xf32>
    %15 = tpu.matmul %12, %14, %cst_11 {dimension_numbers = #tpu.dot_dimension_numbers<[1], [0], [0], [1], [0, 0, 1, 1], [], []>} : vector<8x128xf32>, vector<128x128xf32>, vector<8x128xf32> -> vector<8x128xf32>
    %c1_12 = arith.constant 1 : index
    %c0_13 = arith.constant 0 : index
    %c0_14 = arith.constant 0 : index
    %16 = vector.load %arg2[%c1_12, %c0_13, %c0_14] : memref<2x1x128xf32, #tpu.memory_space<vmem>>, vector<1x1x128xf32>
    %17 = vector.shape_cast %16 : vector<1x1x128xf32> to vector<1x128xf32>
    %18 = vector.broadcast %17 : vector<1x128xf32> to vector<8x128xf32>
    %19 = arith.addf %15, %18 : vector<8x128xf32>
    %cst_15 = arith.constant 0.000000e+00 : f32
    %20 = vector.broadcast %cst_15 : f32 to vector<8x128xf32>
    %21 = arith.cmpf ogt, %19, %20 : vector<8x128xf32>
    %cst_16 = arith.constant 2.000000e-01 : f32
    %22 = vector.broadcast %cst_16 : f32 to vector<8x128xf32>
    %23 = arith.mulf %22, %19 : vector<8x128xf32>
    %24 = arith.select %21, %19, %23 : vector<8x128xi1>, vector<8x128xf32>
    %c0_17 = arith.constant 0 : index
    %c0_18 = arith.constant 0 : index
    %25 = vector.load %arg3[%c0_17, %c0_18] : memref<128x128xf32, #tpu.memory_space<vmem>>, vector<128x128xf32>
    %cst_19 = arith.constant dense<0.000000e+00> : vector<8x128xf32>
    %26 = tpu.matmul %24, %25, %cst_19 {dimension_numbers = #tpu.dot_dimension_numbers<[1], [0], [0], [1], [0, 0, 1, 1], [], []>} : vector<8x128xf32>, vector<128x128xf32>, vector<8x128xf32> -> vector<8x128xf32>
    %c0_20 = arith.constant 0 : index
    %c0_21 = arith.constant 0 : index
    %27 = vector.load %arg4[%c0_20, %c0_21] : memref<1x128xf32, #tpu.memory_space<vmem>>, vector<1x128xf32>
    %28 = vector.broadcast %27 : vector<1x128xf32> to vector<8x128xf32>
    %29 = arith.addf %26, %28 : vector<8x128xf32>
    %c0_22 = arith.constant 0 : index
    %c0_23 = arith.constant 0 : index
    %30 = vector.load %arg9[%c0_22, %c0_23] : memref<8x128xf32, #tpu.memory_space<vmem>>, vector<8x128xf32>
    tpu.vector_store %arg9[%c0_22, %c0_23], %29 {strides = array<i32>} : memref<8x128xf32, #tpu.memory_space<vmem>>, vector<8x128xf32>,
    %c0_24 = arith.constant 0 : index
    %c0_25 = arith.constant 0 : index
    %c0_26 = arith.constant 0 : index
    %31 = vector.load %arg5[%c0_24, %c0_25, %c0_26] : memref<2x128x128xf32, #tpu.memory_space<vmem>>, vector<1x128x128xf32>
    %32 = vector.shape_cast %31 : vector<1x128x128xf32> to vector<128x128xf32>
    %cst_27 = arith.constant dense<0.000000e+00> : vector<8x128xf32>
    %33 = tpu.matmul %0, %32, %cst_27 {dimension_numbers = #tpu.dot_dimension_numbers<[1], [0], [0], [1], [0, 0, 1, 1], [], []>} : vector<8x128xf32>, vector<128x128xf32>, vector<8x128xf32> -> vector<8x128xf32>
    %c0_28 = arith.constant 0 : index
    %c0_29 = arith.constant 0 : index
    %c0_30 = arith.constant 0 : index
    %34 = vector.load %arg6[%c0_28, %c0_29, %c0_30] : memref<2x1x128xf32, #tpu.memory_space<vmem>>, vector<1x1x128xf32>
    %35 = vector.shape_cast %34 : vector<1x1x128xf32> to vector<1x128xf32>
    %36 = vector.broadcast %35 : vector<1x128xf32> to vector<8x128xf32>
    %37 = arith.addf %33, %36 : vector<8x128xf32>
    %cst_31 = arith.constant 0.000000e+00 : f32
    %38 = vector.broadcast %cst_31 : f32 to vector<8x128xf32>
    %39 = arith.cmpf ogt, %37, %38 : vector<8x128xf32>
    %cst_32 = arith.constant 2.000000e-01 : f32
    %40 = vector.broadcast %cst_32 : f32 to vector<8x128xf32>
    %41 = arith.mulf %40, %37 : vector<8x128xf32>
    %42 = arith.select %39, %37, %41 : vector<8x128xi1>, vector<8x128xf32>
    %c1_33 = arith.constant 1 : index
    %c0_34 = arith.constant 0 : index
    %c0_35 = arith.constant 0 : index
    %43 = vector.load %arg5[%c1_33, %c0_34, %c0_35] : memref<2x128x128xf32, #tpu.memory_space<vmem>>, vector<1x128x128xf32>
    %44 = vector.shape_cast %43 : vector<1x128x128xf32> to vector<128x128xf32>
    %cst_36 = arith.constant dense<0.000000e+00> : vector<8x128xf32>
    %45 = tpu.matmul %42, %44, %cst_36 {dimension_numbers = #tpu.dot_dimension_numbers<[1], [0], [0], [1], [0, 0, 1, 1], [], []>} : vector<8x128xf32>, vector<128x128xf32>, vector<8x128xf32> -> vector<8x128xf32>
    %c1_37 = arith.constant 1 : index
    %c0_38 = arith.constant 0 : index
    %c0_39 = arith.constant 0 : index
    %46 = vector.load %arg6[%c1_37, %c0_38, %c0_39] : memref<2x1x128xf32, #tpu.memory_space<vmem>>, vector<1x1x128xf32>
    %47 = vector.shape_cast %46 : vector<1x1x128xf32> to vector<1x128xf32>
    %48 = vector.broadcast %47 : vector<1x128xf32> to vector<8x128xf32>
    %49 = arith.addf %45, %48 : vector<8x128xf32>
    %cst_40 = arith.constant 0.000000e+00 : f32
    %50 = vector.broadcast %cst_40 : f32 to vector<8x128xf32>
    %51 = arith.cmpf ogt, %49, %50 : vector<8x128xf32>
    %cst_41 = arith.constant 2.000000e-01 : f32
    %52 = vector.broadcast %cst_41 : f32 to vector<8x128xf32>
    %53 = arith.mulf %52, %49 : vector<8x128xf32>
    %54 = arith.select %51, %49, %53 : vector<8x128xi1>, vector<8x128xf32>
    %c0_42 = arith.constant 0 : index
    %c0_43 = arith.constant 0 : index
    %55 = vector.load %arg7[%c0_42, %c0_43] : memref<128x128xf32, #tpu.memory_space<vmem>>, vector<128x128xf32>
    %cst_44 = arith.constant dense<0.000000e+00> : vector<8x128xf32>
    %56 = tpu.matmul %54, %55, %cst_44 {dimension_numbers = #tpu.dot_dimension_numbers<[1], [0], [0], [1], [0, 0, 1, 1], [], []>} : vector<8x128xf32>, vector<128x128xf32>, vector<8x128xf32> -> vector<8x128xf32>
    %c0_45 = arith.constant 0 : index
    %c0_46 = arith.constant 0 : index
    %57 = vector.load %arg8[%c0_45, %c0_46] : memref<1x128xf32, #tpu.memory_space<vmem>>, vector<1x128xf32>
    %58 = vector.broadcast %57 : vector<1x128xf32> to vector<8x128xf32>
    %59 = arith.addf %56, %58 : vector<8x128xf32>
    %c0_47 = arith.constant 0 : index
    %c0_48 = arith.constant 0 : index
    %60 = vector.load %arg10[%c0_47, %c0_48] : memref<8x128xf32, #tpu.memory_space<vmem>>, vector<8x128xf32>
    tpu.vector_store %arg10[%c0_47, %c0_48], %59 {strides = array<i32>} : memref<8x128xf32, #tpu.memory_space<vmem>>, vector<8x128xf32>,
    return
  }
}

</mosaic_0001>

<bundles_post_ra>
// kernel: tpu_custom_call.1
= control target key start
LH: loop header
LB: loop body
LE: loop exit
PB: predicated region body
PF: predicated region fallthrough
CT: control target
= control target key end

     0   :  { %16 = vsyncpa [#allocation3], 0  ;;  %s1595_s0 = inlined_call_operand.hbm [shape: f32[8,128], index: 0, kind: input, shape index: {}]   ;;  %s1596_s1 = inlined_call_operand.hbm [shape: f32[2,128,128], index: 1, kind: input, shape index: {}]   ;;  %s1597_s2 = inlined_call_operand.vmem [shape: f32[2,1,128], index: 2, kind: input, shape index: {}]   ;;  %s1598_s3 = inlined_call_operand.hbm [shape: f32[128,128], index: 3, kind: input, shape index: {}]   ;;  %s1599_s4 = inlined_call_operand.vmem [shape: f32[1,128], index: 4, kind: input, shape index: {}]   ;;  %s1600_s5 = inlined_call_operand.hbm [shape: f32[2,128,128], index: 5, kind: input, shape index: {}]   ;;  %s1601_s6 = inlined_call_operand.vmem [shape: f32[2,1,128], index: 6, kind: input, shape index: {}]   ;;  %s1602_s7 = inlined_call_operand.hbm [shape: f32[128,128], index: 7, kind: input, shape index: {}]   ;;  %s1603_s8 = inlined_call_operand.vmem [shape: f32[1,128], index: 8, kind: input, shape index: {}]   ;;  %s1604_s9 = inlined_call_operand.hbm [shape: f32[8,128], index: 9, kind: output, shape index: {0}]   ;;  %s1605_s10 = inlined_call_operand.hbm [shape: f32[8,128], index: 10, kind: output, shape index: {1}]  }
   0x1   :  { %17 = vsyncpa [#allocation6], 0 }
   0x2   :  { %18 = vsyncpa [#allocation9], 0 }
   0x3   :  { %19 = vsyncpa [#allocation4], 0 }
   0x4   :  { %20 = vsyncpa [#allocation13], 0  ;;  %s1350_s13 = smov [#allocation5]   ;;  %s1186_s17 = scalar_lea.hbm %s1596_s1, 4096 }
   0x5   :  { %s36_s14 = sshll.u32 %s1350_s13, 4  ;;  %p1187_p0 = scmp.ne.s32.totalorder %s1596_s1, %s1186_s17  ;;  %s37_s14 = int_to_ptr.vmem [resolvable:$true] %s36_s14 }
   0x6   :  { %p1190_p1 = scmp.lt.u32.totalorder %s1186_s17, %s1596_s1 }
   0x8   :  { %p1192_p2 = pnand %p1190_p1, %p1187_p0 }
   0xa   :  { %1195 = shalt.err (!%p1192_p2)
}
   0xb   :  { %s1196_s22 = scalar_lea.vmem %s37_s14, 4096  ;;  %p1201_p4 = scmp.lt.s32.totalorder %s37_s14, %s37_s14 }
   0xc   :  { %p1197_p3 = scmp.ne.s32.totalorder %s37_s14, %s1196_s22  ;;  %p1202_p5 = scmp.lt.s32.totalorder %s1196_s22, %s1196_s22 }
   0xe   :  { %p1203_p6 = por %p1202_p5, %p1201_p4 }
  0x10   :  { %p1204_p7 = pnand %p1203_p6, %p1197_p3 }
  0x12   :  { %1207 = shalt.err (!%p1204_p7)
}
  0x13   :  { %s1351_s23 = smov 128   ;;  %s1352_s24 = smov 8  }
  0x14   :  { %42 = dma.hbm_to_vmem [thread:$0]  %s1596_s1, 4096, %s37_s14, [#allocation6], %s1351_s23, %s1351_s23, %s1352_s24  }
  0x15   :  { %s1353_s27 = smov [#allocation8]   ;;  %s1354_s29 = smov [#allocation2]  }
  0x16   :  { %s64_s28 = sshll.u32 %s1353_s27, 4  ;;  %s27_s30 = sshll.u32 %s1354_s29, 4  ;;  %s65_s28 = int_to_ptr.vmem [resolvable:$true] %s64_s28  ;;  %s28_s30 = int_to_ptr.vmem [resolvable:$true] %s27_s30 }
  0x17   :  { %s1208_s13 = scalar_lea.hbm %s1600_s5, 4096 }
  0x18   :  { %p1209_p8 = scmp.ne.s32.totalorder %s1600_s5, %s1208_s13  ;;  %p1212_p9 = scmp.lt.u32.totalorder %s1208_s13, %s1600_s5 }
  0x1a   :  { %p1214_p10 = pnand %p1212_p9, %p1209_p8 }
  0x1c   :  { %1217 = shalt.err (!%p1214_p10)
}
  0x1d   :  { %s1218_s1 = scalar_lea.vmem %s65_s28, 4096  ;;  %p1223_p12 = scmp.lt.s32.totalorder %s65_s28, %s65_s28 }
  0x1e   :  { %p1219_p11 = scmp.ne.s32.totalorder %s65_s28, %s1218_s1  ;;  %p1224_p13 = scmp.lt.s32.totalorder %s1218_s1, %s1218_s1 }
  0x20   :  { %p1225_p0 = por %p1224_p13, %p1223_p12 }
  0x22   :  { %p1226_p1 = pnand %p1225_p0, %p1219_p11 }
  0x24   :  { %1229 = shalt.err (!%p1226_p1)
}
  0x25   :  { %70 = dma.hbm_to_vmem [thread:$0]  %s1600_s5, 4096, %s65_s28, [#allocation9], %s1351_s23, %s1351_s23, %s1352_s24  }
  0x26   :  { %s1230_s22 = scalar_lea.hbm %s1595_s0, 128 }
  0x27   :  { %p1231_p2 = scmp.ne.s32.totalorder %s1595_s0, %s1230_s22  ;;  %p1234_p3 = scmp.lt.u32.totalorder %s1230_s22, %s1595_s0 }
  0x29   :  { %p1236_p4 = pnand %p1234_p3, %p1231_p2 }
  0x2b   :  { %1239 = shalt.err (!%p1236_p4)
}
  0x2c   :  { %s1240_s11 = scalar_lea.vmem %s28_s30, 128  ;;  %p1245_p6 = scmp.lt.s32.totalorder %s28_s30, %s28_s30 }
  0x2d   :  { %p1241_p5 = scmp.ne.s32.totalorder %s28_s30, %s1240_s11  ;;  %p1246_p7 = scmp.lt.s32.totalorder %s1240_s11, %s1240_s11 }
  0x2f   :  { %p1247_p8 = por %p1246_p7, %p1245_p6 }
  0x31   :  { %p1248_p9 = pnand %p1247_p8, %p1241_p5 }
  0x33   :  { %1251 = shalt.err (!%p1248_p9)
}
  0x34   :  { %30 = dma.hbm_to_vmem [thread:$0]  %s1595_s0, 128, %s28_s30, [#allocation3]  }
  0x35   :  { %s1355_s12 = smov [#allocation7]   ;;  %s1356_s15 = smov [#allocation10]  }
  0x36   :  { %s50_s13 = sshll.u32 %s1355_s12, 4  ;;  %s78_s16 = sshll.u32 %s1356_s15, 4  ;;  %s51_s13 = int_to_ptr.vmem [resolvable:$true] %s50_s13  ;;  %s79_s16 = int_to_ptr.vmem [resolvable:$true] %s78_s16 }
  0x37   :  { %s1252_s1 = scalar_lea.hbm %s1598_s3, 2048 }
  0x38   :  { %p1253_p10 = scmp.ne.s32.totalorder %s1598_s3, %s1252_s1  ;;  %p1256_p11 = scmp.lt.u32.totalorder %s1252_s1, %s1598_s3 }
  0x3a   :  { %p1258_p12 = pnand %p1256_p11, %p1253_p10 }
  0x3c   :  { %1261 = shalt.err (!%p1258_p12)
}
  0x3d   :  { %s1262_s0 = scalar_lea.vmem %s51_s13, 2048  ;;  %p1267_p0 = scmp.lt.s32.totalorder %s51_s13, %s51_s13 }
  0x3e   :  { %p1263_p13 = scmp.ne.s32.totalorder %s51_s13, %s1262_s0  ;;  %p1268_p1 = scmp.lt.s32.totalorder %s1262_s0, %s1262_s0 }
  0x40   :  { %p1269_p2 = por %p1268_p1, %p1267_p0 }
  0x42   :  { %p1270_p3 = pnand %p1269_p2, %p1263_p13 }
  0x44   :  { %1273 = shalt.err (!%p1270_p3)
}
  0x45   :  { %56 = dma.hbm_to_vmem [thread:$0]  %s1598_s3, 2048, %s51_s13, [#allocation6], %s1351_s23, %s1351_s23, %s1352_s24  }
  0x46   :  { %s1274_s27 = scalar_lea.hbm %s1602_s7, 2048 }
  0x47   :  { %p1275_p4 = scmp.ne.s32.totalorder %s1602_s7, %s1274_s27  ;;  %p1278_p5 = scmp.lt.u32.totalorder %s1274_s27, %s1602_s7 }
  0x49   :  { %p1280_p6 = pnand %p1278_p5, %p1275_p4 }
  0x4b   :  { %1283 = shalt.err (!%p1280_p6)
}
  0x4c   :  { %s1284_s12 = scalar_lea.vmem %s79_s16, 2048  ;;  %p1289_p8 = scmp.lt.s32.totalorder %s79_s16, %s79_s16 }
  0x4d   :  { %p1285_p7 = scmp.ne.s32.totalorder %s79_s16, %s1284_s12  ;;  %p1290_p9 = scmp.lt.s32.totalorder %s1284_s12, %s1284_s12 }
  0x4f   :  { %p1291_p10 = por %p1290_p9, %p1289_p8 }
  0x51   :  { %p1292_p11 = pnand %p1291_p10, %p1285_p7 }
  0x53   :  { %1295 = shalt.err (!%p1292_p11)
}
  0x54   :  { %84 = dma.hbm_to_vmem [thread:$0]  %s1602_s7, 2048, %s79_s16, [#allocation9], %s1351_s23, %s1351_s23, %s1352_s24  }
  0x55   :  { %1340 = dma.done.wait [#allocation3], 128  }
  0x56   :  { %1341 = vsyncadd [#allocation3], 4294967168 }
  0x57   :  { %1342 = dma.done.wait [#allocation6], 6144  }
  0x58   :  { %1343 = vsyncadd [#allocation6], 4294961152 }
  0x59   :  { %1344 = dma.done.wait [#allocation9], 6144  }
  0x5a   :  { %1345 = vsyncadd [#allocation9], 4294961152  ;;  %v1357_v0 = vmov 0.0|0.0   ;;  %vm1358_vm0 = vmmov 0   ;;  %v1359_v1 = vmov 0.0   ;;  %v103_v2 = vld [vmem:[#allocation5] sm:$0xff] }
  0x5b   :  { %1030 = vmatprep.subr.bf16.mxu0 %v1357_v0  ;;  %852 = vmatprep.mubr.msk.f32.mxu0 %vm1358_vm0, %v1359_v1  ;;  %v104_v3 = vld [vmem:[#allocation5 + $0x8] sm:$0xff]  ;;  %v105_v4 = vld [vmem:[#allocation5 + $0x10] sm:$0xff]  ;;  %v106_v6 = vld [vmem:[#allocation5 + $0x18] sm:$0xff]  ;;  %s1360_s19 = smov [#allocation11]  }
  0x5c   :  { %1054 = vmatprep.subr.bf16.mxu1 %v1357_v0  ;;  %887 = vmatprep.mubr.msk.f32.mxu1 %vm1358_vm0, %v1359_v1  ;;  %v1031_v5 = vpack.c.bf16 %v104_v3, %v103_v2  ;;  %v1034_v7 = vpack.c.bf16 %v106_v6, %v105_v4  ;;  %v107_v8 = vld [vmem:[#allocation5 + $0x20] sm:$0xff]  ;;  %v108_v9 = vld [vmem:[#allocation5 + $0x28] sm:$0xff]  ;;  %v202_v12 = vld [vmem:[#allocation5 + $0x90] sm:$0xff]  ;;  %s685_s20 = sshll.u32 %s1360_s19, 4  ;;  %s686_s20 = int_to_ptr.vmem [resolvable:$true] %s685_s20 }
  0x5d   :  { %v200_v10 = vld [vmem:[#allocation5 + $0x80] sm:$0xff]  ;;  %v201_v11 = vld [vmem:[#allocation5 + $0x88] sm:$0xff]  ;;  %v203_v13 = vld [vmem:[#allocation5 + $0x98] sm:$0xff]  ;;  %v1037_v14 = vpack.c.bf16 %v108_v9, %v107_v8  ;;  %s1296_s21 = scalar_lea.vmem %s686_s20, 128  ;;  %p1301_p13 = scmp.lt.s32.totalorder %s686_s20, %s686_s20 }
  0x5e   :  { %1032 = vmatpush3.bf16.msra.mxu0 %v1031_v5  ;;  %v1055_v15 = vpack.c.bf16 %v201_v11, %v200_v10  ;;  %v109_v16 = vld [vmem:[#allocation5 + $0x30] sm:$0xff]  ;;  %v110_v17 = vld [vmem:[#allocation5 + $0x38] sm:$0xff]  ;;  %v1058_v18 = vpack.c.bf16 %v203_v13, %v202_v12  ;;  %v204_v19 = vld [vmem:[#allocation5 + $0xa0] sm:$0xff]  ;;  %p1297_p12 = scmp.ne.s32.totalorder %s686_s20, %s1296_s21  ;;  %p1302_p0 = scmp.lt.s32.totalorder %s1296_s21, %s1296_s21 }
  0x5f   :  { %1033 = vmatprep.subr.bf16.mxu0 %v1357_v0  ;;  %v205_v20 = vld [vmem:[#allocation5 + $0xa8] sm:$0xff]  ;;  %v1040_v21 = vpack.c.bf16 %v110_v17, %v109_v16  ;;  %v111_v22 = vld [vmem:[#allocation5 + $0x40] sm:$0xff]  ;;  %v206_v25 = vld [vmem:[#allocation5 + $0xb0] sm:$0xff] }
  0x60   :  { %1056 = vmatpush3.bf16.msra.mxu1 %v1055_v15  ;;  %v112_v23 = vld [vmem:[#allocation5 + $0x48] sm:$0xff]  ;;  %v1061_v24 = vpack.c.bf16 %v205_v20, %v204_v19  ;;  %v207_v26 = vld [vmem:[#allocation5 + $0xb8] sm:$0xff]  ;;  %v113_v28 = vld [vmem:[#allocation5 + $0x50] sm:$0xff]  ;;  %p1303_p1 = por %p1302_p0, %p1301_p13 }
  0x61   :  { %1057 = vmatprep.subr.bf16.mxu1 %v1357_v0  ;;  %v1043_v27 = vpack.c.bf16 %v112_v23, %v111_v22  ;;  %v114_v29 = vld [vmem:[#allocation5 + $0x58] sm:$0xff]  ;;  %v1064_v30 = vpack.c.bf16 %v207_v26, %v206_v25  ;;  %v208_v31 = vld [vmem:[#allocation5 + $0xc0] sm:$0xff]  ;;  %v209_v32 = vld [vmem:[#allocation5 + $0xc8] sm:$0xff] }
  0x62   :  { %1035 = vmatpush3.bf16.msra.mxu0 %v1034_v7  ;;  %v1046_v33 = vpack.c.bf16 %v114_v29, %v113_v28  ;;  %v115_v34 = vld [vmem:[#allocation5 + $0x60] sm:$0xff]  ;;  %v116_v35 = vld [vmem:[#allocation5 + $0x68] sm:$0xff]  ;;  %v1067_v36 = vpack.c.bf16 %v209_v32, %v208_v31  ;;  %v210_v37 = vld [vmem:[#allocation5 + $0xd0] sm:$0xff]  ;;  %p1304_p2 = pnand %p1303_p1, %p1297_p12 }
  0x63   :  { %1036 = vmatprep.subr.bf16.mxu0 %v1357_v0  ;;  %v211_v38 = vld [vmem:[#allocation5 + $0xd8] sm:$0xff]  ;;  %v1049_v39 = vpack.c.bf16 %v116_v35, %v115_v34  ;;  %v117_v40 = vld [vmem:[#allocation5 + $0x70] sm:$0xff]  ;;  %v212_v43 = vld [vmem:[#allocation5 + $0xe0] sm:$0xff] }
  0x64   :  { %1059 = vmatpush3.bf16.msra.mxu1 %v1058_v18  ;;  %v118_v41 = vld [vmem:[#allocation5 + $0x78] sm:$0xff]  ;;  %v1070_v42 = vpack.c.bf16 %v211_v38, %v210_v37  ;;  %v213_v44 = vld [vmem:[#allocation5 + $0xe8] sm:$0xff]  ;;  %v214_v48 = vld [vmem:[#allocation5 + $0xf0] sm:$0xff] }
  0x65   :  { %1060 = vmatprep.subr.bf16.mxu1 %v1357_v0  ;;  %v1052_v45 = vpack.c.bf16 %v118_v41, %v117_v40  ;;  %v1073_v46 = vpack.c.bf16 %v213_v44, %v212_v43  ;;  %v1508_v47 = vld [vmem:[#allocation2] sm:$0xff]  ;;  %v297_v51 = vld [vmem:[#allocation7] sm:$0xff]  ;;  %v298_v52 = vld [vmem:[#allocation7 + $0x8] sm:$0xff] }
  0x66   :  { %1038 = vmatpush3.bf16.msra.mxu0 %v1037_v14  ;;  %v215_v49 = vld [vmem:[#allocation5 + $0xf8] sm:$0xff]  ;;  %v299_v53 = vld [vmem:[#allocation7 + $0x10] sm:$0xff]  ;;  %v1079_v54 = vpack.c.bf16 %v298_v52, %v297_v51  ;;  %v301_v57 = vld [vmem:[#allocation7 + $0x20] sm:$0xff] }
  0x67   :  { %1039 = vmatprep.subr.bf16.mxu0 %v1357_v0  ;;  %v1076_v50 = vpack.c.bf16 %v215_v49, %v214_v48  ;;  %v300_v55 = vld [vmem:[#allocation7 + $0x18] sm:$0xff]  ;;  %v302_v58 = vld [vmem:[#allocation7 + $0x28] sm:$0xff]  ;;  %v303_v60 = vld [vmem:[#allocation7 + $0x30] sm:$0xff] }
  0x68   :  { %1062 = vmatpush3.bf16.msra.mxu1 %v1061_v24  ;;  %v1082_v56 = vpack.c.bf16 %v300_v55, %v299_v53  ;;  %v1085_v59 = vpack.c.bf16 %v302_v58, %v301_v57  ;;  %v304_v61 = vld [vmem:[#allocation7 + $0x38] sm:$0xff]  ;;  %v305_v63 = vld [vmem:[#allocation7 + $0x40] sm:$0xff]  ;;  %v306_v2 = vld [vmem:[#allocation7 + $0x48] sm:$0xff] }
  0x69   :  { %1063 = vmatprep.subr.bf16.mxu1 %v1357_v0  ;;  %v1088_v62 = vpack.c.bf16 %v304_v61, %v303_v60  ;;  %v1091_v3 = vpack.c.bf16 %v306_v2, %v305_v63  ;;  %v307_v4 = vld [vmem:[#allocation7 + $0x50] sm:$0xff]  ;;  %v308_v5 = vld [vmem:[#allocation7 + $0x58] sm:$0xff]  ;;  %v309_v7 = vld [vmem:[#allocation7 + $0x60] sm:$0xff] }
  0x6a   :  { %1041 = vmatpush3.bf16.msra.mxu0 %v1040_v21  ;;  %v1094_v6 = vpack.c.bf16 %v308_v5, %v307_v4  ;;  %v310_v8 = vld [vmem:[#allocation7 + $0x68] sm:$0xff]  ;;  %v710_v10 = vld [vmem:[%s1597_s2] ss:$0 sm:$0xff]  ;;  %v391_v12 = vld [vmem:[#allocation8] sm:$0xff] }
  0x6b   :  { %1042 = vmatprep.subr.bf16.mxu0 %v1357_v0  ;;  %v1097_v9 = vpack.c.bf16 %v310_v8, %v309_v7  ;;  %v392_v13 = vld [vmem:[#allocation8 + $0x8] sm:$0xff]  ;;  %v393_v18 = vld [vmem:[#allocation8 + $0x10] sm:$0xff]  ;;  %v394_v19 = vld [vmem:[#allocation8 + $0x18] sm:$0xff] }
  0x6c   :  { %1065 = vmatpush3.bf16.msra.mxu1 %v1064_v30  ;;  %v1103_v17 = vpack.c.bf16 %v392_v13, %v391_v12  ;;  %v1106_v21 = vpack.c.bf16 %v394_v19, %v393_v18  ;;  %v395_v22 = vld [vmem:[#allocation8 + $0x20] sm:$0xff]  ;;  %v396_v23 = vld [vmem:[#allocation8 + $0x28] sm:$0xff]  ;;  %v397_v25 = vld [vmem:[#allocation8 + $0x30] sm:$0xff] }
  0x6d   :  { %1066 = vmatprep.subr.bf16.mxu1 %v1357_v0  ;;  %v1109_v24 = vpack.c.bf16 %v396_v23, %v395_v22  ;;  %v398_v26 = vld [vmem:[#allocation8 + $0x38] sm:$0xff]  ;;  %v399_v28 = vld [vmem:[#allocation8 + $0x40] sm:$0xff]  ;;  %v400_v29 = vld [vmem:[#allocation8 + $0x48] sm:$0xff] }
  0x6e   :  { %1044 = vmatpush3.bf16.msra.mxu0 %v1043_v27  ;;  %v1112_v27 = vpack.c.bf16 %v398_v26, %v397_v25  ;;  %v1115_v30 = vpack.c.bf16 %v400_v29, %v399_v28  ;;  %v401_v31 = vld [vmem:[#allocation8 + $0x50] sm:$0xff]  ;;  %v402_v32 = vld [vmem:[#allocation8 + $0x58] sm:$0xff]  ;;  %v403_v34 = vld [vmem:[#allocation8 + $0x60] sm:$0xff] }
  0x6f   :  { %1045 = vmatprep.subr.bf16.mxu0 %v1357_v0  ;;  %v404_v35 = vld [vmem:[#allocation8 + $0x68] sm:$0xff]  ;;  %v405_v37 = vld [vmem:[#allocation8 + $0x70] sm:$0xff]  ;;  %v406_v38 = vld [vmem:[#allocation8 + $0x78] sm:$0xff] }
  0x70   :  { %1068 = vmatpush3.bf16.msra.mxu1 %v1067_v36  ;;  %v1121_v36 = vpack.c.bf16 %v404_v35, %v403_v34  ;;  %v311_v40 = vld [vmem:[#allocation7 + $0x70] sm:$0xff]  ;;  %v312_v41 = vld [vmem:[#allocation7 + $0x78] sm:$0xff]  ;;  %v492_v55 = vld [vmem:[#allocation8 + $0xa0] sm:$0xff] }
  0x71   :  { %1069 = vmatprep.subr.bf16.mxu1 %v1357_v0  ;;  %v712_v43 = vld [vmem:[%s1597_s2 + $0x1] ss:$0 sm:$0xff]  ;;  %v490_v51 = vld [vmem:[#allocation8 + $0x90] sm:$0xff]  ;;  %v496_v61 = vld [vmem:[#allocation8 + $0xc0] sm:$0xff] }
  0x72   :  { %1047 = vmatpush3.bf16.msra.mxu0 %v1046_v33  ;;  %v1118_v33 = vpack.c.bf16 %v402_v32, %v401_v31  ;;  %v491_v52 = vld [vmem:[#allocation8 + $0x98] sm:$0xff]  ;;  %v494_v58 = vld [vmem:[#allocation8 + $0xb0] sm:$0xff]  ;;  %v500_v4 = vld [vmem:[#allocation8 + $0xe0] sm:$0xff] }
  0x73   :  { %1048 = vmatprep.subr.bf16.mxu0 %v1357_v0  ;;  %v499_v2 = vld [vmem:[#allocation8 + $0xd8] sm:$0xff]  ;;  %v501_v5 = vld [vmem:[#allocation8 + $0xe8] sm:$0xff]  ;;  %v502_v7 = vld [vmem:[#allocation8 + $0xf0] sm:$0xff] }
  0x74   :  { %1071 = vmatpush3.bf16.msra.mxu1 %v1070_v42  ;;  %v1100_v42 = vpack.c.bf16 %v312_v41, %v311_v40  ;;  %v503_v8 = vld [vmem:[#allocation8 + $0xf8] sm:$0xff]  ;;  %v587_v18 = vld [vmem:[#allocation10 + $0x10] sm:$0xff]  ;;  %v589_v22 = vld [vmem:[#allocation10 + $0x20] sm:$0xff] }
  0x75   :  { %1072 = vmatprep.subr.bf16.mxu1 %v1357_v0  ;;  %v590_v23 = vld [vmem:[#allocation10 + $0x28] sm:$0xff]  ;;  %v591_v25 = vld [vmem:[#allocation10 + $0x30] sm:$0xff]  ;;  %v592_v26 = vld [vmem:[#allocation10 + $0x38] sm:$0xff] }
  0x76   :  { %1050 = vmatpush3.bf16.msra.mxu0 %v1049_v39  ;;  %v1124_v39 = vpack.c.bf16 %v406_v38, %v405_v37  ;;  %v593_v28 = vld [vmem:[#allocation10 + $0x40] sm:$0xff]  ;;  %v594_v29 = vld [vmem:[#allocation10 + $0x48] sm:$0xff]  ;;  %v595_v31 = vld [vmem:[#allocation10 + $0x50] sm:$0xff] }
  0x77   :  { %1051 = vmatprep.subr.bf16.mxu0 %v1357_v0  ;;  %v596_v32 = vld [vmem:[#allocation10 + $0x58] sm:$0xff]  ;;  %v597_v34 = vld [vmem:[#allocation10 + $0x60] sm:$0xff]  ;;  %v598_v35 = vld [vmem:[#allocation10 + $0x68] sm:$0xff] }
  0x78   :  { %1074 = vmatpush3.bf16.msra.mxu1 %v1073_v46  ;;  %v489_v46 = vld [vmem:[#allocation8 + $0x88] sm:$0xff]  ;;  %v599_v37 = vld [vmem:[#allocation10 + $0x70] sm:$0xff]  ;;  %v600_v38 = vld [vmem:[#allocation10 + $0x78] sm:$0xff] }
  0x79   :  { %1075 = vmatprep.subr.bf16.mxu1 %v1357_v0  ;;  %v713_v40 = vld [vmem:[%s1599_s4] ss:$0 sm:$0xff] }
  0x7a   :  { %1053 = vmatpush3.bf16.msra.mxu0 %v1052_v45  ;;  %v488_v45 = vld [vmem:[#allocation8 + $0x80] sm:$0xff] }
  0x7b   :  { %1078 = vmatprep.subr.bf16.mxu0 %v1357_v0 }
  0x7c   :  { %1077 = vmatpush3.bf16.msra.mxu1 %v1076_v50  ;;  %v1127_v50 = vpack.c.bf16 %v489_v46, %v488_v45 }
  0x7d   :  { %853 = vmatmul.mubr.f32.vlgmr.msra.gmra.mrb[0].mxu0 %v1508_v47  ;;  %1102 = vmatprep.subr.bf16.mxu1 %v1357_v0 }
  0x7e   :  { %922 = vmatprep.mubr.msk.f32.mxu0 %vm1358_vm0, %v1359_v1  ;;  %1080 = vmatpush3.bf16.msra.mxu0 %v1079_v54  ;;  %v1130_v54 = vpack.c.bf16 %v491_v52, %v490_v51 }
  0x7f   :  { %1081 = vmatprep.subr.bf16.mxu0 %v1357_v0 }
  0x82   :  { %1083 = vmatpush3.bf16.msra.mxu0 %v1082_v56  ;;  %v493_v56 = vld [vmem:[#allocation8 + $0xa8] sm:$0xff] }
  0x83   :  { %1084 = vmatprep.subr.bf16.mxu0 %v1357_v0  ;;  %v1133_v57 = vpack.c.bf16 %v493_v56, %v492_v55 }
  0x86   :  { %1086 = vmatpush3.bf16.msra.mxu0 %v1085_v59  ;;  %v495_v59 = vld [vmem:[#allocation8 + $0xb8] sm:$0xff] }
  0x87   :  { %1087 = vmatprep.subr.bf16.mxu0 %v1357_v0  ;;  %v1136_v60 = vpack.c.bf16 %v495_v59, %v494_v58 }
  0x8a   :  { %1089 = vmatpush3.bf16.msra.mxu0 %v1088_v62  ;;  %v497_v62 = vld [vmem:[#allocation8 + $0xc8] sm:$0xff] }
  0x8b   :  { %1090 = vmatprep.subr.bf16.mxu0 %v1357_v0  ;;  %v1139_v63 = vpack.c.bf16 %v497_v62, %v496_v61 }
  0x8e   :  { %1092 = vmatpush3.bf16.msra.mxu0 %v1091_v3 }
  0x8f   :  { %1093 = vmatprep.subr.bf16.mxu0 %v1357_v0 }
  0x92   :  { %1095 = vmatpush3.bf16.msra.mxu0 %v1094_v6  ;;  %v1145_v6 = vpack.c.bf16 %v501_v5, %v500_v4 }
  0x93   :  { %1096 = vmatprep.subr.bf16.mxu0 %v1357_v0 }
  0x96   :  { %1098 = vmatpush3.bf16.msra.mxu0 %v1097_v9  ;;  %v714_v9 = vld [vmem:[%s1601_s6] ss:$0 sm:$0xff] }
  0x97   :  { %1099 = vmatprep.subr.bf16.mxu0 %v1357_v0 }
  0x9a   :  { %1101 = vmatpush3.bf16.msra.mxu0 %v1100_v42 }
  0x9b   :  { %1126 = vmatprep.subr.bf16.mxu0 %v1357_v0 }
 0x150   :  { %v192_v11 = vpop.f32.mrb[0].mxu0 }
 0x151   :  { %v193_v14 = vadd.f32 %v710_v10, %v192_v11  ;;  %v854_v15 = vpop.f32.mrb[1].mxu0  ;;  %v1148_v10 = vpack.c.bf16 %v503_v8, %v502_v7 }
 0x153   :  { %v197_v16 = vmul.f32 0.2, %v193_v14  ;;  %vm196_vm1 = vcmp.gt.f32.partialorder %v193_v14, 0.0 }
 0x155   :  { %v198_v20 = vsel %vm196_vm1, %v193_v14, %v197_v16  ;;  %v585_v16 = vld [vmem:[#allocation10] sm:$0xff] }
 0x156   :  { %888 = vmatmul.mubr.f32.vlgmr.msra.gmra.mrb[0].mxu1 %v198_v20  ;;  %v588_v20 = vld [vmem:[#allocation10 + $0x18] sm:$0xff] }
 0x157   :  { %1104 = vmatpush3.bf16.msra.mxu1 %v1103_v17  ;;  %957 = vmatprep.mubr.msk.f32.mxu1 %vm1358_vm0, %v1359_v1  ;;  %v586_v17 = vld [vmem:[#allocation10 + $0x8] sm:$0xff] }
 0x158   :  { %1105 = vmatprep.subr.bf16.mxu1 %v1357_v0  ;;  %v1151_v19 = vpack.c.bf16 %v586_v17, %v585_v16 }
 0x15b   :  { %1107 = vmatpush3.bf16.msra.mxu1 %v1106_v21  ;;  %v1154_v21 = vpack.c.bf16 %v588_v20, %v587_v18 }
 0x15c   :  { %1108 = vmatprep.subr.bf16.mxu1 %v1357_v0 }
 0x15f   :  { %1110 = vmatpush3.bf16.msra.mxu1 %v1109_v24  ;;  %v1157_v24 = vpack.c.bf16 %v590_v23, %v589_v22 }
 0x160   :  { %1111 = vmatprep.subr.bf16.mxu1 %v1357_v0 }
 0x163   :  { %1113 = vmatpush3.bf16.msra.mxu1 %v1112_v27  ;;  %v1160_v27 = vpack.c.bf16 %v592_v26, %v591_v25 }
 0x164   :  { %1114 = vmatprep.subr.bf16.mxu1 %v1357_v0 }
 0x167   :  { %1116 = vmatpush3.bf16.msra.mxu1 %v1115_v30  ;;  %v1163_v30 = vpack.c.bf16 %v594_v29, %v593_v28 }
 0x168   :  { %1117 = vmatprep.subr.bf16.mxu1 %v1357_v0 }
 0x16b   :  { %1119 = vmatpush3.bf16.msra.mxu1 %v1118_v33  ;;  %v1166_v33 = vpack.c.bf16 %v596_v32, %v595_v31 }
 0x16c   :  { %1120 = vmatprep.subr.bf16.mxu1 %v1357_v0 }
 0x16f   :  { %1122 = vmatpush3.bf16.msra.mxu1 %v1121_v36  ;;  %v1169_v36 = vpack.c.bf16 %v598_v35, %v597_v34 }
 0x170   :  { %1123 = vmatprep.subr.bf16.mxu1 %v1357_v0 }
 0x173   :  { %1125 = vmatpush3.bf16.msra.mxu1 %v1124_v39  ;;  %v1172_v39 = vpack.c.bf16 %v600_v38, %v599_v37 }
 0x174   :  { %1150 = vmatprep.subr.bf16.mxu1 %v1357_v0 }
 0x176   :  { %958 = vmatmul.mubr.f32.vlgmr.msra.gmra.mrb[2].mxu1 %v1508_v47 }
 0x177   :  { %1027 = vmatprep.mubr.msk.f32.mxu1 %vm1358_vm0, %v1359_v1  ;;  %1152 = vmatpush3.bf16.msra.mxu1 %v1151_v19 }
 0x178   :  { %1153 = vmatprep.subr.bf16.mxu1 %v1357_v0 }
 0x17b   :  { %1155 = vmatpush3.bf16.msra.mxu1 %v1154_v21 }
 0x17c   :  { %1156 = vmatprep.subr.bf16.mxu1 %v1357_v0 }
 0x17f   :  { %1158 = vmatpush3.bf16.msra.mxu1 %v1157_v24 }
 0x180   :  { %1159 = vmatprep.subr.bf16.mxu1 %v1357_v0 }
 0x183   :  { %1161 = vmatpush3.bf16.msra.mxu1 %v1160_v27 }
 0x184   :  { %1162 = vmatprep.subr.bf16.mxu1 %v1357_v0 }
 0x187   :  { %1164 = vmatpush3.bf16.msra.mxu1 %v1163_v30 }
 0x188   :  { %1165 = vmatprep.subr.bf16.mxu1 %v1357_v0 }
 0x18b   :  { %1167 = vmatpush3.bf16.msra.mxu1 %v1166_v33 }
 0x18c   :  { %1168 = vmatprep.subr.bf16.mxu1 %v1357_v0 }
 0x18f   :  { %1170 = vmatpush3.bf16.msra.mxu1 %v1169_v36 }
 0x190   :  { %1171 = vmatprep.subr.bf16.mxu1 %v1357_v0 }
 0x193   :  { %1173 = vmatpush3.bf16.msra.mxu1 %v1172_v39 }
 0x229   :  { %v290_v44 = vpop.f32.mrb[0].mxu1 }
 0x22a   :  { %v291_v48 = vadd.f32 %v712_v43, %v290_v44  ;;  %v889_v49 = vpop.f32.mrb[1].mxu1  ;;  %v716_v44 = vld [vmem:[%s1601_s6 + $0x1] ss:$0 sm:$0xff] }
 0x22c   :  { %vm294_vm2 = vcmp.gt.f32.partialorder %v291_v48, 0.0  ;;  %v295_v47 = vmul.f32 0.2, %v291_v48 }
 0x22e   :  { %v296_v53 = vsel %vm294_vm2, %v291_v48, %v295_v47 }
 0x22f   :  { %923 = vmatmul.mubr.f32.vlgmr.msra.gmra.mrb[2].mxu0 %v296_v53 }
 0x230   :  { %1128 = vmatpush3.bf16.msra.mxu0 %v1127_v50  ;;  %992 = vmatprep.mubr.msk.f32.mxu0 %vm1358_vm0, %v1359_v1  ;;  %v498_v1 = vld [vmem:[#allocation8 + $0xd0] sm:$0xff] }
 0x231   :  { %1129 = vmatprep.subr.bf16.mxu0 %v1357_v0  ;;  %v1142_v3 = vpack.c.bf16 %v499_v2, %v498_v1 }
 0x234   :  { %1131 = vmatpush3.bf16.msra.mxu0 %v1130_v54 }
 0x235   :  { %1132 = vmatprep.subr.bf16.mxu0 %v1357_v0 }
 0x238   :  { %1134 = vmatpush3.bf16.msra.mxu0 %v1133_v57 }
 0x239   :  { %1135 = vmatprep.subr.bf16.mxu0 %v1357_v0 }
 0x23c   :  { %1137 = vmatpush3.bf16.msra.mxu0 %v1136_v60 }
 0x23d   :  { %1138 = vmatprep.subr.bf16.mxu0 %v1357_v0 }
 0x240   :  { %1140 = vmatpush3.bf16.msra.mxu0 %v1139_v63 }
 0x241   :  { %1141 = vmatprep.subr.bf16.mxu0 %v1357_v0 }
 0x244   :  { %1143 = vmatpush3.bf16.msra.mxu0 %v1142_v3 }
 0x245   :  { %1144 = vmatprep.subr.bf16.mxu0 %v1357_v0 }
 0x248   :  { %1146 = vmatpush3.bf16.msra.mxu0 %v1145_v6 }
 0x249   :  { %v480_v11 = vpop.f32.mrb[2].mxu1  ;;  %1147 = vmatprep.subr.bf16.mxu0 %v1357_v0 }
 0x24a   :  { %v481_v12 = vadd.f32 %v714_v9, %v480_v11  ;;  %v959_v13 = vpop.f32.mrb[3].mxu1 }
 0x24c   :  { %vm484_vm3 = vcmp.gt.f32.partialorder %v481_v12, 0.0  ;;  %v485_v14 = vmul.f32 0.2, %v481_v12  ;;  %1149 = vmatpush3.bf16.msra.mxu0 %v1148_v10 }
 0x24e   :  { %v486_v15 = vsel %vm484_vm3, %v481_v12, %v485_v14 }
 0x24f   :  { %993 = vmatmul.mubr.f32.vlgmr.msra.gmra.mrb[4].mxu0 %v486_v15 }
 0x302   :  { %v386_v41 = vpop.f32.mrb[2].mxu0 }
 0x303   :  { %v387_v42 = vadd.f32 %v713_v40, %v386_v41  ;;  %v924_v43 = vpop.f32.mrb[3].mxu0 }
 0x305   :  { %390 = vst [vmem:[#allocation11] sm:$0xff] %v387_v42 }
 0x322   :  { %v578_v45 = vpop.f32.mrb[4].mxu0 }
 0x323   :  { %v579_v46 = vadd.f32 %v716_v44, %v578_v45  ;;  %v994_v48 = vpop.f32.mrb[5].mxu0 }
 0x325   :  { %vm582_vm4 = vcmp.gt.f32.partialorder %v579_v46, 0.0  ;;  %v583_v0 = vmul.f32 0.2, %v579_v46 }
 0x327   :  { %v584_v49 = vsel %vm582_vm4, %v579_v46, %v583_v0 }
 0x328   :  { %1028 = vmatmul.mubr.f32.vlgmr.msra.gmra.mrb[4].mxu1 %v584_v49 }
 0x329   :  { %1307 = shalt.err (!%p1304_p2)
}
 0x32a   :  { %s1308_s6 = scalar_lea.hbm %s1604_s9, 128 }
 0x32b   :  { %p1309_p3 = scmp.ne.s32.totalorder %s1604_s9, %s1308_s6  ;;  %p1312_p4 = scmp.lt.u32.totalorder %s1308_s6, %s1604_s9 }
 0x32d   :  { %p1314_p5 = pnand %p1312_p4, %p1309_p3 }
 0x32f   :  { %1317 = shalt.err (!%p1314_p5)
}
 0x330   :  { %688 = dma.vmem_to_hbm [thread:$0]  %s686_s20, 128, %s1604_s9, [#allocation4]   ;;  %v717_v47 = vld [vmem:[%s1603_s8] ss:$0 sm:$0xff] }
 0x331   :  { %s1361_s28 = smov [#allocation12]  }
 0x332   :  { %s695_s12 = sshll.u32 %s1361_s28, 4  ;;  %s696_s12 = int_to_ptr.vmem [resolvable:$true] %s695_s12 }
 0x333   :  { %s1318_s3 = scalar_lea.vmem %s696_s12, 128  ;;  %p1323_p7 = scmp.lt.s32.totalorder %s696_s12, %s696_s12 }
 0x334   :  { %p1319_p6 = scmp.ne.s32.totalorder %s696_s12, %s1318_s3  ;;  %p1324_p8 = scmp.lt.s32.totalorder %s1318_s3, %s1318_s3 }
 0x336   :  { %p1325_p9 = por %p1324_p8, %p1323_p7 }
 0x338   :  { %p1326_p10 = pnand %p1325_p9, %p1319_p6 }
 0x3fb   :  { %v674_v50 = vpop.f32.mrb[4].mxu1 }
 0x3fc   :  { %v675_v51 = vadd.f32 %v717_v47, %v674_v50  ;;  %v1029_v52 = vpop.f32.mrb[5].mxu1 }
 0x3fe   :  { %678 = vst [vmem:[#allocation12] sm:$0xff] %v675_v51 }
 0x3ff   :  { %1329 = shalt.err (!%p1326_p10)
}
 0x400   :  { %s1330_s7 = scalar_lea.hbm %s1605_s10, 128 }
 0x401   :  { %p1331_p11 = scmp.ne.s32.totalorder %s1605_s10, %s1330_s7  ;;  %p1334_p12 = scmp.lt.u32.totalorder %s1330_s7, %s1605_s10 }
 0x403   :  { %p1336_p13 = pnand %p1334_p12, %p1331_p11 }
 0x405   :  { %1339 = shalt.err (!%p1336_p13)
}
 0x406   :  { %698 = dma.vmem_to_hbm [thread:$0]  %s696_s12, 128, %s1605_s10, [#allocation13]  }
 0x407   :  { %1346 = dma.done.wait [#allocation4], 128  }
 0x408   :  { %1347 = vsyncadd [#allocation4], 4294967168 }
 0x409   :  { %1348 = dma.done.wait [#allocation13], 128  }
 0x40a   :  { %1349 = vsyncadd [#allocation13], 4294967168 }
 0x40b   :  { %705 = vsyncpa [#allocation3], 1 }
 0x40c   :  { %706 = vsyncpa [#allocation6], 1 }
 0x40d   :  { %707 = vsyncpa [#allocation9], 1 }
 0x40e   :  { %708 = vsyncpa [#allocation4], 1 }
 0x40f   :  { %709 = vsyncpa [#allocation13], 1 }

</bundles_post_ra>
